<compile_context>
chip_gen: v7x
topology: tpu7x:2x2x1
jax: 0.10.0
libtpu: 0.0.40
codegen_flags: <defaults>
</compile_context>

<pallas_src>
from functools import partial

import numpy as np
import jax
import jax.numpy as jnp
from jax.experimental import pallas as pl
from jax.experimental.pallas import tpu as pltpu


def _round_up(x, m):
    return (x + m - 1) // m * m


def _skip_mlp_kernel(x_ref, w0_ref, b0_ref, w1_ref, b1_ref,
                     w2a_ref, w2b_ref, b2_ref,
                     wd_ref, bd_ref, gum_ref, edge_ref):
    """Fused SkipMLP forward for one batch block:
       h0 = relu(x  @ W0 + b0)                       (skip branch)
       h1 = relu(h0 @ W1 + b1)
       h2 = relu(h1 @ W2a + h0 @ W2b + b2)           (concat -> row-split matmul)
       edge = 1.0 iff (h2 @ Wd + bd) >= (g1 - g0)    (hard Gumbel-softmax, tau=1,
                                                      class-0 indicator folded
                                                      into a difference matmul;
                                                      padded cols forced to 0
                                                      via bd = -1e30)
    """
    x = x_ref[...]

    # layer 0: Linear(cond_dim -> arch[0]) + ReLU  (also the skip)
    h0 = jnp.dot(x, w0_ref[...], preferred_element_type=jnp.float32) + b0_ref[...]
    h0 = jnp.maximum(h0, 0.0)

    # layer 1: Linear(arch[0] -> arch[1]) + ReLU
    h1 = jnp.dot(h0, w1_ref[...], preferred_element_type=jnp.float32) + b1_ref[...]
    h1 = jnp.maximum(h1, 0.0)

    # layer 2: Linear(concat([h1, skip]) -> arch[2]) + ReLU, as a row-split matmul.
    h2 = (jnp.dot(h1, w2a_ref[...], preferred_element_type=jnp.float32)
          + jnp.dot(h0, w2b_ref[...], preferred_element_type=jnp.float32)
          + b2_ref[...])
    h2 = jnp.maximum(h2, 0.0)

    # layer 3 + hard Gumbel-softmax, folded: zd = h2 @ (W3_even - W3_odd) + b_diff.
    # Big weight is bf16; cast h2 too so the MXU runs one bf16 pass with f32
    # accumulation.  Compare and store stay in f32 (v5e has no bf16 VALU).
    zd = (jnp.dot(h2.astype(jnp.bfloat16), wd_ref[...],
                  preferred_element_type=jnp.float32)
          + bd_ref[...])

    # Gumbel difference computed in-kernel (class1 - class0).
    gd = gum_ref[1] - gum_ref[0]
    edge_ref[...] = (zd >= gd).astype(jnp.float32)


def prepare_params(params, arch=(16, 32, 64), n_nodes=50):
    """One-time parameter preparation (hoisted out of the forward pass)."""
    w0, b0, w1, b1, w2, b2, w3, b3 = params
    a0, a1 = arch[0], arch[1]
    assert w2.shape[0] == a1 + a0, "concat-layer weight rows must be arch[1]+arch[0]"

    n_edges = n_nodes * (n_nodes - 1) // 2
    n_pad = _round_up(n_edges, 128)                 # lane-dense width (1225 -> 1280)

    # torch.cat((x, skip), dim=1): first a1 rows act on h1, last a0 rows on h0.
    w2a = w2[:a1]
    w2b = w2[a1:]

    # Fold the two-class argmax into a difference matmul; pad columns to n_pad.
    wd = w3[:, 0::2] - w3[:, 1::2]                  # [arch[2], n_edges]
    bd = b3[:, 0::2] - b3[:, 1::2]                  # [1, n_edges]
    wd = jnp.pad(wd, ((0, 0), (0, n_pad - n_edges))).astype(jnp.bfloat16)
    # Padded columns get a huge negative bias so the kernel forces them to 0,
    # making the padded output safe to consume (diagonal sentinel below).
    bd = jnp.pad(bd.astype(jnp.float32), ((0, 0), (0, n_pad - n_edges)),
                 constant_values=-1e30)

    # Symmetric gather map: adj[b, i, j] = edges[b, idx_map[i, j]].
    # Both triangles point at the same edge; the diagonal points at a padded
    # (always-zero) edge column -> no mask, no transpose, no scatter needed.
    iu, ju = np.triu_indices(n_nodes, k=1)
    e = np.arange(n_edges, dtype=np.int32)
    idx_map = np.full((n_nodes, n_nodes), n_edges, dtype=np.int32)
    idx_map[iu, ju] = e
    idx_map[ju, iu] = e

    return {
        "w0": w0, "b0": b0, "w1": w1, "b1": b1,
        "w2a": w2a, "w2b": w2b, "b2": b2,
        "wd": wd, "bd": bd,
        "idx_map": jnp.asarray(idx_map),
    }


@partial(jax.jit, static_argnames=("n_nodes",))
def skip_mlp_forward(prep, stats, gumbel, *, n_nodes):
    """stats: [B, cond_dim] f32; gumbel: [2, B, n_pad] f32 Gumbel(0,1) noise
    (gumbel[0] = class-0 noise, gumbel[1] = class-1 noise; columns >= n_edges
    are ignored).  Returns adjacency [B, n_nodes, n_nodes]."""
    B, cond_dim = stats.shape
    n_edges = n_nodes * (n_nodes - 1) // 2
    n_pad = _round_up(n_edges, 128)

    # Batch blocking: pad to a sublane multiple of 8 (full-sublane loads/stores,
    # full 8-row MXU operand) and cap blocks at 512 rows so the double-buffered
    # per-step footprint (~16 MiB) fits v7x's 64 MiB VMEM with headroom.
    b_blk = min(512, _round_up(B, 8))
    b_pad = _round_up(B, b_blk)
    if b_pad != B:
        stats = jnp.pad(stats, ((0, b_pad - B), (0, 0)))
        gumbel = jnp.pad(gumbel, ((0, 0), (0, b_pad - B), (0, 0)))

    def full_spec(shape):
        return pl.BlockSpec(shape, lambda i: (0,) * len(shape))

    edges = pl.pallas_call(
        _skip_mlp_kernel,
        out_shape=jax.ShapeDtypeStruct((b_pad, n_pad), jnp.float32),
        grid=(b_pad // b_blk,),
        in_specs=[
            pl.BlockSpec((b_blk, cond_dim), lambda i: (i, 0)),      # stats
            full_spec(prep["w0"].shape), full_spec(prep["b0"].shape),
            full_spec(prep["w1"].shape), full_spec(prep["b1"].shape),
            full_spec(prep["w2a"].shape), full_spec(prep["w2b"].shape),
            full_spec(prep["b2"].shape),
            full_spec(prep["wd"].shape), full_spec(prep["bd"].shape),
            pl.BlockSpec((2, b_blk, n_pad), lambda i: (0, i, 0)),   # gumbel
        ],
        out_specs=pl.BlockSpec((b_blk, n_pad), lambda i: (i, 0)),
        compiler_params=pltpu.CompilerParams(
            dimension_semantics=("parallel",)),
    )(stats, prep["w0"], prep["b0"], prep["w1"], prep["b1"],
      prep["w2a"], prep["w2b"], prep["b2"], prep["wd"], prep["bd"], gumbel)

    # Single symmetric gather builds the full adjacency directly from the
    # (safe) padded edge row; diagonal hits a forced-zero padded column.
    # TODO(synk): this gather could also be fused into the kernel if dispatch
    # overhead still dominates after batching.
    adj = jnp.take(edges[:B], prep["idx_map"], axis=1)
    return adj


def init_params(key, arch=(16, 32, 64), n_nodes=50, cond_dim=7):
    """Deterministic PyTorch-Linear-style init (uniform +-1/sqrt(fan_in))."""
    dims_in = [cond_dim, arch[0], arch[1] + arch[0], arch[2]]
    dims_out = [arch[0], arch[1], arch[2], 2 * n_nodes * (n_nodes - 1) // 2]
    params = []
    for din, dout in zip(dims_in, dims_out):
        key, kw, kb = jax.random.split(key, 3)
        bound = 1.0 / float(din) ** 0.5
        w = jax.random.uniform(kw, (din, dout), jnp.float32, -bound, bound)
        b = jax.random.uniform(kb, (1, dout), jnp.float32, -bound, bound)
        params += [w, b]
    return params


def skip_mlp_reference(params, stats, g0, g1, n_nodes):
    """Pure-JAX f32 reference matching the PyTorch module (for a sanity check)."""
    w0, b0, w1, b1, w2, b2, w3, b3 = params
    h0 = jax.nn.relu(stats @ w0 + b0)
    h1 = jax.nn.relu(h0 @ w1 + b1)
    h2 = jax.nn.relu(jnp.concatenate([h1, h0], axis=1) @ w2 + b2)
    z = (h2 @ w3 + b3).reshape(stats.shape[0], -1, 2)
    edges = ((z[..., 0] + g0) >= (z[..., 1] + g1)).astype(jnp.float32)
    iu, ju = jnp.triu_indices(n_nodes, k=1)
    adj = jnp.zeros((stats.shape[0], n_nodes, n_nodes), jnp.float32)
    adj = adj.at[:, iu, ju].set(edges)
    return adj + jnp.swapaxes(adj, 1, 2)


if __name__ == "__main__":
    ARCH = (16, 32, 64)
    N_NODES = 50
    COND_DIM = 7
    BATCH = 4

    key = jax.random.PRNGKey(0)
    kp, kx, kg = jax.random.split(key, 3)

    params = init_params(kp, ARCH, N_NODES, COND_DIM)
    prep = prepare_params(params, ARCH, N_NODES)            # one-time prep

    n_edges = N_NODES * (N_NODES - 1) // 2
    n_pad = _round_up(n_edges, 128)

    stats = jax.random.normal(kx, (BATCH, COND_DIM), jnp.float32)   # data.stats
    # Gumbel noise generated directly in the kernel-friendly [2, B, n_pad]
    # layout (class axis first); columns >= n_edges are ignored.
    gumbel = jax.random.gumbel(kg, (2, BATCH, n_pad), jnp.float32)

    adj = skip_mlp_forward(prep, stats, gumbel, n_nodes=N_NODES)
    adj = jax.block_until_ready(adj)

    # Structural checks (match the PyTorch module's output properties).
    assert adj.shape == (BATCH, N_NODES, N_NODES)
    assert bool(jnp.all(adj == jnp.swapaxes(adj, 1, 2)))             # symmetric
    assert bool(jnp.all((adj == 0.0) | (adj == 1.0)))                # hard samples
    assert bool(jnp.all(jnp.diagonal(adj, axis1=1, axis2=2) == 0.0)) # no self-loops

    # Agreement with a pure f32 reference; bf16 last-layer weights may flip a
    # handful of near-tie edges, so allow a tiny tolerance.
    g0 = gumbel[0, :, :n_edges]
    g1 = gumbel[1, :, :n_edges]
    adj_ref = skip_mlp_reference(params, stats, g0, g1, N_NODES)
    match = float(jnp.mean((adj == adj_ref).astype(jnp.float32)))
    assert match >= 0.95, f"adjacency mismatch vs reference: match={match}"

    print("KERNEL_OK")
</pallas_src>

<mosaic_0001>
module attributes {stable_mosaic.version = 11 : i64} {
  func.func @_skip_mlp_kernel(%arg0: i32, %arg1: memref<8x7xf32, #tpu.memory_space<vmem>>, %arg2: memref<7x16xf32, #tpu.memory_space<vmem>>, %arg3: memref<1x16xf32, #tpu.memory_space<vmem>>, %arg4: memref<16x32xf32, #tpu.memory_space<vmem>>, %arg5: memref<1x32xf32, #tpu.memory_space<vmem>>, %arg6: memref<32x64xf32, #tpu.memory_space<vmem>>, %arg7: memref<16x64xf32, #tpu.memory_space<vmem>>, %arg8: memref<1x64xf32, #tpu.memory_space<vmem>>, %arg9: memref<64x1280xbf16, #tpu.memory_space<vmem>>, %arg10: memref<1x1280xf32, #tpu.memory_space<vmem>>, %arg11: memref<2x8x1280xf32, #tpu.memory_space<vmem>>, %arg12: memref<8x1280xf32, #tpu.memory_space<vmem>>) attributes {dimension_semantics = [#tpu.dimension_semantics<parallel>], iteration_bounds = array<i64: 1>, scalar_prefetch = 0 : i64, scratch_operands = 0 : i64, tpu.core_type = #tpu.core_type<tc>, window_params = [{transform_indices = @transform_0, window_bounds = array<i64: 8, 7>}, {pipeline_mode = #tpu.pipeline_mode<synchronous>, transform_indices = @transform_1, window_bounds = array<i64: 7, 16>}, {pipeline_mode = #tpu.pipeline_mode<synchronous>, transform_indices = @transform_2, window_bounds = array<i64: 1, 16>}, {pipeline_mode = #tpu.pipeline_mode<synchronous>, transform_indices = @transform_3, window_bounds = array<i64: 16, 32>}, {pipeline_mode = #tpu.pipeline_mode<synchronous>, transform_indices = @transform_4, window_bounds = array<i64: 1, 32>}, {pipeline_mode = #tpu.pipeline_mode<synchronous>, transform_indices = @transform_5, window_bounds = array<i64: 32, 64>}, {pipeline_mode = #tpu.pipeline_mode<synchronous>, transform_indices = @transform_6, window_bounds = array<i64: 16, 64>}, {pipeline_mode = #tpu.pipeline_mode<synchronous>, transform_indices = @transform_7, window_bounds = array<i64: 1, 64>}, {pipeline_mode = #tpu.pipeline_mode<synchronous>, transform_indices = @transform_8, window_bounds = array<i64: 64, 1280>}, {pipeline_mode = #tpu.pipeline_mode<synchronous>, transform_indices = @transform_9, window_bounds = array<i64: 1, 1280>}, {transform_indices = @transform_10, window_bounds = array<i64: 2, 8, 1280>}, {transform_indices = @transform_11, window_bounds = array<i64: 8, 1280>}]} {
    %c0 = arith.constant 0 : index
    %c0_0 = arith.constant 0 : index
    %0 = vector.load %arg1[%c0, %c0_0] : memref<8x7xf32, #tpu.memory_space<vmem>>, vector<8x7xf32>
    %c0_1 = arith.constant 0 : index
    %c0_2 = arith.constant 0 : index
    %1 = vector.load %arg2[%c0_1, %c0_2] : memref<7x16xf32, #tpu.memory_space<vmem>>, vector<7x16xf32>
    %cst = arith.constant dense<0.000000e+00> : vector<8x16xf32>
    %2 = tpu.matmul %0, %1, %cst {dimension_numbers = #tpu.dot_dimension_numbers<[1], [0], [0], [1], [0, 0, 1, 1], [], []>} : vector<8x7xf32>, vector<7x16xf32>, vector<8x16xf32> -> vector<8x16xf32>
    %c0_3 = arith.constant 0 : index
    %c0_4 = arith.constant 0 : index
    %3 = vector.load %arg3[%c0_3, %c0_4] : memref<1x16xf32, #tpu.memory_space<vmem>>, vector<1x16xf32>
    %4 = vector.broadcast %3 : vector<1x16xf32> to vector<8x16xf32>
    %5 = arith.addf %2, %4 : vector<8x16xf32>
    %cst_5 = arith.constant 0.000000e+00 : f32
    %6 = vector.broadcast %cst_5 : f32 to vector<8x16xf32>
    %7 = arith.maximumf %5, %6 : vector<8x16xf32>
    %c0_6 = arith.constant 0 : index
    %c0_7 = arith.constant 0 : index
    %8 = vector.load %arg4[%c0_6, %c0_7] : memref<16x32xf32, #tpu.memory_space<vmem>>, vector<16x32xf32>
    %cst_8 = arith.constant dense<0.000000e+00> : vector<8x32xf32>
    %9 = tpu.matmul %7, %8, %cst_8 {dimension_numbers = #tpu.dot_dimension_numbers<[1], [0], [0], [1], [0, 0, 1, 1], [], []>} : vector<8x16xf32>, vector<16x32xf32>, vector<8x32xf32> -> vector<8x32xf32>
    %c0_9 = arith.constant 0 : index
    %c0_10 = arith.constant 0 : index
    %10 = vector.load %arg5[%c0_9, %c0_10] : memref<1x32xf32, #tpu.memory_space<vmem>>, vector<1x32xf32>
    %11 = vector.broadcast %10 : vector<1x32xf32> to vector<8x32xf32>
    %12 = arith.addf %9, %11 : vector<8x32xf32>
    %cst_11 = arith.constant 0.000000e+00 : f32
    %13 = vector.broadcast %cst_11 : f32 to vector<8x32xf32>
    %14 = arith.maximumf %12, %13 : vector<8x32xf32>
    %c0_12 = arith.constant 0 : index
    %c0_13 = arith.constant 0 : index
    %15 = vector.load %arg6[%c0_12, %c0_13] : memref<32x64xf32, #tpu.memory_space<vmem>>, vector<32x64xf32>
    %cst_14 = arith.constant dense<0.000000e+00> : vector<8x64xf32>
    %16 = tpu.matmul %14, %15, %cst_14 {dimension_numbers = #tpu.dot_dimension_numbers<[1], [0], [0], [1], [0, 0, 1, 1], [], []>} : vector<8x32xf32>, vector<32x64xf32>, vector<8x64xf32> -> vector<8x64xf32>
    %c0_15 = arith.constant 0 : index
    %c0_16 = arith.constant 0 : index
    %17 = vector.load %arg7[%c0_15, %c0_16] : memref<16x64xf32, #tpu.memory_space<vmem>>, vector<16x64xf32>
    %cst_17 = arith.constant dense<0.000000e+00> : vector<8x64xf32>
    %18 = tpu.matmul %7, %17, %cst_17 {dimension_numbers = #tpu.dot_dimension_numbers<[1], [0], [0], [1], [0, 0, 1, 1], [], []>} : vector<8x16xf32>, vector<16x64xf32>, vector<8x64xf32> -> vector<8x64xf32>
    %19 = arith.addf %16, %18 : vector<8x64xf32>
    %c0_18 = arith.constant 0 : index
    %c0_19 = arith.constant 0 : index
    %20 = vector.load %arg8[%c0_18, %c0_19] : memref<1x64xf32, #tpu.memory_space<vmem>>, vector<1x64xf32>
    %21 = vector.broadcast %20 : vector<1x64xf32> to vector<8x64xf32>
    %22 = arith.addf %19, %21 : vector<8x64xf32>
    %cst_20 = arith.constant 0.000000e+00 : f32
    %23 = vector.broadcast %cst_20 : f32 to vector<8x64xf32>
    %24 = arith.maximumf %22, %23 : vector<8x64xf32>
    %25 = arith.truncf %24 : vector<8x64xf32> to vector<8x64xbf16>
    %c0_21 = arith.constant 0 : index
    %c0_22 = arith.constant 0 : index
    %26 = vector.load %arg9[%c0_21, %c0_22] : memref<64x1280xbf16, #tpu.memory_space<vmem>>, vector<64x1280xbf16>
    %cst_23 = arith.constant dense<0.000000e+00> : vector<8x1280xf32>
    %27 = tpu.matmul %25, %26, %cst_23 {dimension_numbers = #tpu.dot_dimension_numbers<[1], [0], [0], [1], [0, 0, 1, 1], [], []>} : vector<8x64xbf16>, vector<64x1280xbf16>, vector<8x1280xf32> -> vector<8x1280xf32>
    %c0_24 = arith.constant 0 : index
    %c0_25 = arith.constant 0 : index
    %28 = vector.load %arg10[%c0_24, %c0_25] : memref<1x1280xf32, #tpu.memory_space<vmem>>, vector<1x1280xf32>
    %29 = vector.broadcast %28 : vector<1x1280xf32> to vector<8x1280xf32>
    %30 = arith.addf %27, %29 : vector<8x1280xf32>
    %c1 = arith.constant 1 : index
    %c0_26 = arith.constant 0 : index
    %c0_27 = arith.constant 0 : index
    %31 = vector.load %arg11[%c1, %c0_26, %c0_27] : memref<2x8x1280xf32, #tpu.memory_space<vmem>>, vector<1x8x1280xf32>
    %32 = vector.shape_cast %31 : vector<1x8x1280xf32> to vector<8x1280xf32>
    %c0_28 = arith.constant 0 : index
    %c0_29 = arith.constant 0 : index
    %c0_30 = arith.constant 0 : index
    %33 = vector.load %arg11[%c0_28, %c0_29, %c0_30] : memref<2x8x1280xf32, #tpu.memory_space<vmem>>, vector<1x8x1280xf32>
    %34 = vector.shape_cast %33 : vector<1x8x1280xf32> to vector<8x1280xf32>
    %35 = arith.subf %32, %34 : vector<8x1280xf32>
    %36 = arith.cmpf oge, %30, %35 : vector<8x1280xf32>
    %37 = arith.extui %36 : vector<8x1280xi1> to vector<8x1280xi32>
    %38 = arith.sitofp %37 : vector<8x1280xi32> to vector<8x1280xf32>
    %c0_31 = arith.constant 0 : index
    %c0_32 = arith.constant 0 : index
    %39 = vector.load %arg12[%c0_31, %c0_32] : memref<8x1280xf32, #tpu.memory_space<vmem>>, vector<8x1280xf32>
    tpu.vector_store %arg12[%c0_31, %c0_32], %38 {strides = array<i32>} : memref<8x1280xf32, #tpu.memory_space<vmem>>, vector<8x1280xf32>,
    return
  }
  func.func @transform_0(%arg0: i32) -> (i32, i32) {
    %c0_i32 = arith.constant 0 : i32
    %c0_i32_0 = arith.constant 0 : i32
    return %arg0, %c0_i32 : i32, i32
  }
  func.func @transform_1(%arg0: i32) -> (i32, i32) {
    %c0_i32 = arith.constant 0 : i32
    %c0_i32_0 = arith.constant 0 : i32
    %c0_i32_1 = arith.constant 0 : i32
    return %c0_i32, %c0_i32_0 : i32, i32
  }
  func.func @transform_2(%arg0: i32) -> (i32, i32) {
    %c0_i32 = arith.constant 0 : i32
    %c0_i32_0 = arith.constant 0 : i32
    %c0_i32_1 = arith.constant 0 : i32
    return %c0_i32, %c0_i32_0 : i32, i32
  }
  func.func @transform_3(%arg0: i32) -> (i32, i32) {
    %c0_i32 = arith.constant 0 : i32
    %c0_i32_0 = arith.constant 0 : i32
    %c0_i32_1 = arith.constant 0 : i32
    return %c0_i32, %c0_i32_0 : i32, i32
  }
  func.func @transform_4(%arg0: i32) -> (i32, i32) {
    %c0_i32 = arith.constant 0 : i32
    %c0_i32_0 = arith.constant 0 : i32
    %c0_i32_1 = arith.constant 0 : i32
    return %c0_i32, %c0_i32_0 : i32, i32
  }
  func.func @transform_5(%arg0: i32) -> (i32, i32) {
    %c0_i32 = arith.constant 0 : i32
    %c0_i32_0 = arith.constant 0 : i32
    %c0_i32_1 = arith.constant 0 : i32
    return %c0_i32, %c0_i32_0 : i32, i32
  }
  func.func @transform_6(%arg0: i32) -> (i32, i32) {
    %c0_i32 = arith.constant 0 : i32
    %c0_i32_0 = arith.constant 0 : i32
    %c0_i32_1 = arith.constant 0 : i32
    return %c0_i32, %c0_i32_0 : i32, i32
  }
  func.func @transform_7(%arg0: i32) -> (i32, i32) {
    %c0_i32 = arith.constant 0 : i32
    %c0_i32_0 = arith.constant 0 : i32
    %c0_i32_1 = arith.constant 0 : i32
    return %c0_i32, %c0_i32_0 : i32, i32
  }
  func.func @transform_8(%arg0: i32) -> (i32, i32) {
    %c0_i32 = arith.constant 0 : i32
    %c0_i32_0 = arith.constant 0 : i32
    %c0_i32_1 = arith.constant 0 : i32
    return %c0_i32, %c0_i32_0 : i32, i32
  }
  func.func @transform_9(%arg0: i32) -> (i32, i32) {
    %c0_i32 = arith.constant 0 : i32
    %c0_i32_0 = arith.constant 0 : i32
    %c0_i32_1 = arith.constant 0 : i32
    return %c0_i32, %c0_i32_0 : i32, i32
  }
  func.func @transform_10(%arg0: i32) -> (i32, i32, i32) {
    %c0_i32 = arith.constant 0 : i32
    %c0_i32_0 = arith.constant 0 : i32
    %c0_i32_1 = arith.constant 0 : i32
    return %c0_i32, %arg0, %c0_i32_0 : i32, i32, i32
  }
  func.func @transform_11(%arg0: i32) -> (i32, i32) {
    %c0_i32 = arith.constant 0 : i32
    %c0_i32_0 = arith.constant 0 : i32
    return %arg0, %c0_i32 : i32, i32
  }
}

</mosaic_0001>

<bundles_post_ra>
// kernel: skip_mlp_forward.1
= control target key start
LH: loop header
LB: loop body
LE: loop exit
PB: predicated region body
PF: predicated region fallthrough
CT: control target
= control target key end

     0   :  { %16 = vsyncpa [#allocation3], 0  ;;  %s1822_s0 = inlined_call_operand.vmem [shape: f32[8,7], index: 0, kind: input, shape index: {}]   ;;  %s1823_s1 = inlined_call_operand.hbm [shape: f32[7,16], index: 1, kind: input, shape index: {}]   ;;  %s1824_s2 = inlined_call_operand.hbm [shape: f32[1,16], index: 2, kind: input, shape index: {}]   ;;  %s1825_s3 = inlined_call_operand.hbm [shape: f32[16,32], index: 3, kind: input, shape index: {}]   ;;  %s1826_s4 = inlined_call_operand.hbm [shape: f32[1,32], index: 4, kind: input, shape index: {}]   ;;  %s1827_s5 = inlined_call_operand.hbm [shape: f32[32,64], index: 5, kind: input, shape index: {}]   ;;  %s1828_s6 = inlined_call_operand.hbm [shape: f32[16,64], index: 6, kind: input, shape index: {}]   ;;  %s1829_s7 = inlined_call_operand.hbm [shape: f32[1,64], index: 7, kind: input, shape index: {}]   ;;  %s1830_s8 = inlined_call_operand.hbm [shape: bf16[64,1280], index: 8, kind: input, shape index: {}]   ;;  %s1831_s9 = inlined_call_operand.hbm [shape: f32[1,1280], index: 9, kind: input, shape index: {}]   ;;  %s1832_s10 = inlined_call_operand.vmem [shape: f32[2,8,1280], index: 10, kind: input, shape index: {}]   ;;  %s1833_s11 = inlined_call_operand.vmem [shape: f32[8,1280], index: 11, kind: output, shape index: {}]  }
   0x1   :  { %17 = vsyncpa [#allocation5], 0 }
   0x2   :  { %18 = vsyncpa [#allocation8], 0 }
   0x3   :  { %19 = vsyncpa [#allocation11], 0 }
   0x4   :  { %20 = vsyncpa [#allocation14], 0  ;;  %s1479_s17 = smov [#allocation4]   ;;  %s1480_s19 = smov [#allocation7]  }
   0x5   :  { %s39_s18 = sshll.u32 %s1479_s17, 4  ;;  %s61_s20 = sshll.u32 %s1480_s19, 4  ;;  %s40_s18 = int_to_ptr.vmem [resolvable:$true] %s39_s18  ;;  %s62_s20 = int_to_ptr.vmem [resolvable:$true] %s61_s20 }
   0x6   :  { %s1271_s23 = scalar_lea.hbm %s1824_s2, 16 }
   0x7   :  { %p1272_p0 = scmp.ne.s32.totalorder %s1824_s2, %s1271_s23  ;;  %p1275_p1 = scmp.lt.u32.totalorder %s1271_s23, %s1824_s2 }
   0x9   :  { %p1277_p2 = pnand %p1275_p1, %p1272_p0 }
   0xb   :  { %1280 = shalt.err (!%p1277_p2)
}
   0xc   :  { %s1281_s28 = scalar_lea.vmem %s40_s18, 16  ;;  %s1285_s29 = scalar_lea.vmem %s40_s18, 32 }
   0xd   :  { %p1282_p3 = scmp.ne.s32.totalorder %s40_s18, %s1281_s28  ;;  %p1286_p4 = scmp.lt.s32.totalorder %s40_s18, %s40_s18 }
   0xe   :  { %p1287_p5 = scmp.lt.s32.totalorder %s1285_s29, %s1281_s28 }
  0x10   :  { %p1288_p6 = por %p1287_p5, %p1286_p4 }
  0x12   :  { %p1289_p7 = pnand %p1288_p6, %p1282_p3 }
  0x14   :  { %1292 = shalt.err (!%p1289_p7)
}
  0x15   :  { %42 = dma.hbm_to_vmem [thread:$0]  %s1824_s2, 16, %s40_s18, [#allocation5]  }
  0x16   :  { %s1293_s15 = scalar_lea.hbm %s1826_s4, 16 }
  0x17   :  { %p1294_p8 = scmp.ne.s32.totalorder %s1826_s4, %s1293_s15  ;;  %p1297_p9 = scmp.lt.u32.totalorder %s1293_s15, %s1826_s4 }
  0x19   :  { %p1299_p10 = pnand %p1297_p9, %p1294_p8 }
  0x1b   :  { %1302 = shalt.err (!%p1299_p10)
}
  0x1c   :  { %s1303_s22 = scalar_lea.vmem %s62_s20, 16  ;;  %s1307_s23 = scalar_lea.vmem %s62_s20, 32 }
  0x1d   :  { %p1304_p11 = scmp.ne.s32.totalorder %s62_s20, %s1303_s22  ;;  %p1308_p12 = scmp.lt.s32.totalorder %s62_s20, %s62_s20 }
  0x1e   :  { %p1309_p13 = scmp.lt.s32.totalorder %s1307_s23, %s1303_s22 }
  0x20   :  { %p1310_p0 = por %p1309_p13, %p1308_p12 }
  0x22   :  { %p1311_p1 = pnand %p1310_p0, %p1304_p11 }
  0x24   :  { %1314 = shalt.err (!%p1311_p1)
}
  0x25   :  { %64 = dma.hbm_to_vmem [thread:$0]  %s1826_s4, 16, %s62_s20, [#allocation8]  }
  0x26   :  { %s1481_s24 = smov [#allocation10]   ;;  %s1482_s26 = smov [#allocation13]  }
  0x27   :  { %s82_s25 = sshll.u32 %s1481_s24, 4  ;;  %s104_s27 = sshll.u32 %s1482_s26, 4  ;;  %s83_s25 = int_to_ptr.vmem [resolvable:$true] %s82_s25  ;;  %s1580_s27 = int_to_ptr.vmem [resolvable:$true] %s104_s27 }
  0x28   :  { %s1315_s30 = scalar_lea.hbm %s1828_s6, 256 }
  0x29   :  { %p1316_p2 = scmp.ne.s32.totalorder %s1828_s6, %s1315_s30  ;;  %p1319_p3 = scmp.lt.u32.totalorder %s1315_s30, %s1828_s6 }
  0x2b   :  { %p1321_p4 = pnand %p1319_p3, %p1316_p2 }
  0x2d   :  { %1324 = shalt.err (!%p1321_p4)
}
  0x2e   :  { %s1325_s4 = scalar_lea.vmem %s83_s25, 256  ;;  %p1330_p6 = scmp.lt.s32.totalorder %s83_s25, %s83_s25 }
  0x2f   :  { %p1326_p5 = scmp.ne.s32.totalorder %s83_s25, %s1325_s4  ;;  %p1331_p7 = scmp.lt.s32.totalorder %s1325_s4, %s1325_s4 }
  0x31   :  { %p1332_p8 = por %p1331_p7, %p1330_p6 }
  0x33   :  { %p1333_p9 = pnand %p1332_p8, %p1326_p5 }
  0x35   :  { %1336 = shalt.err (!%p1333_p9)
}
  0x36   :  { %s1483_s20 = smov 128   ;;  %s1484_s16 = smov 8  }
  0x37   :  { %88 = dma.hbm_to_vmem [thread:$0]  %s1828_s6, 256, %s83_s25, [#allocation11], %s1483_s20, %s1483_s20, %s1484_s16  }
  0x38   :  { %s1337_s23 = scalar_lea.hbm %s1830_s8, 5120 }
  0x39   :  { %p1338_p10 = scmp.ne.s32.totalorder %s1830_s8, %s1337_s23  ;;  %p1341_p11 = scmp.lt.u32.totalorder %s1337_s23, %s1830_s8 }
  0x3b   :  { %p1343_p12 = pnand %p1341_p11, %p1338_p10 }
  0x3d   :  { %1346 = shalt.err (!%p1343_p12)
}
  0x3e   :  { %s1347_s28 = scalar_lea.vmem %s1580_s27, 5120  ;;  %p1352_p0 = scmp.lt.s32.totalorder %s1580_s27, %s1580_s27 }
  0x3f   :  { %p1348_p13 = scmp.ne.s32.totalorder %s1580_s27, %s1347_s28  ;;  %p1353_p1 = scmp.lt.s32.totalorder %s1347_s28, %s1347_s28 }
  0x41   :  { %p1354_p2 = por %p1353_p1, %p1352_p0 }
  0x43   :  { %p1355_p3 = pnand %p1354_p2, %p1348_p13 }
  0x45   :  { %1358 = shalt.err (!%p1355_p3)
}
  0x46   :  { %s1485_s6 = smov 640   ;;  %s1486_s25 = smov 40  }
  0x47   :  { %110 = dma.hbm_to_vmem [thread:$0]  %s1830_s8, 5120, %s1580_s27, [#allocation14], %s1485_s6, %s1485_s6, %s1486_s25  }
  0x48   :  { %s1487_s12 = smov [#allocation2]   ;;  %s1488_s14 = smov [#allocation6]  }
  0x49   :  { %s29_s13 = sshll.u32 %s1487_s12, 4  ;;  %s48_s15 = sshll.u32 %s1488_s14, 4  ;;  %s30_s13 = int_to_ptr.vmem [resolvable:$true] %s29_s13  ;;  %s1614_s15 = int_to_ptr.vmem [resolvable:$true] %s48_s15 }
  0x4a   :  { %s1359_s19 = scalar_lea.hbm %s1823_s1, 128 }
  0x4b   :  { %p1360_p4 = scmp.ne.s32.totalorder %s1823_s1, %s1359_s19  ;;  %p1363_p5 = scmp.lt.u32.totalorder %s1359_s19, %s1823_s1 }
  0x4d   :  { %p1365_p6 = pnand %p1363_p5, %p1360_p4 }
  0x4f   :  { %1368 = shalt.err (!%p1365_p6)
}
  0x50   :  { %s1369_s8 = scalar_lea.vmem %s30_s13, 128  ;;  %p1374_p8 = scmp.lt.s32.totalorder %s30_s13, %s30_s13 }
  0x51   :  { %p1370_p7 = scmp.ne.s32.totalorder %s30_s13, %s1369_s8  ;;  %p1375_p9 = scmp.lt.s32.totalorder %s1369_s8, %s1369_s8 }
  0x53   :  { %p1376_p10 = por %p1375_p9, %p1374_p8 }
  0x55   :  { %p1377_p11 = pnand %p1376_p10, %p1370_p7 }
  0x57   :  { %1380 = shalt.err (!%p1377_p11)
}
  0x58   :  { %32 = dma.hbm_to_vmem [thread:$0]  %s1823_s1, 128, %s30_s13, [#allocation3]  }
  0x59   :  { %s1381_s28 = scalar_lea.hbm %s1825_s3, 256 }
  0x5a   :  { %p1382_p12 = scmp.ne.s32.totalorder %s1825_s3, %s1381_s28  ;;  %p1385_p13 = scmp.lt.u32.totalorder %s1381_s28, %s1825_s3 }
  0x5c   :  { %p1387_p0 = pnand %p1385_p13, %p1382_p12 }
  0x5e   :  { %1390 = shalt.err (!%p1387_p0)
}
  0x5f   :  { %s1391_s12 = scalar_lea.vmem %s1614_s15, 256  ;;  %p1396_p2 = scmp.lt.s32.totalorder %s1614_s15, %s1614_s15 }
  0x60   :  { %p1392_p1 = scmp.ne.s32.totalorder %s1614_s15, %s1391_s12  ;;  %p1397_p3 = scmp.lt.s32.totalorder %s1391_s12, %s1391_s12 }
  0x62   :  { %p1398_p4 = por %p1397_p3, %p1396_p2 }
  0x64   :  { %p1399_p5 = pnand %p1398_p4, %p1392_p1 }
  0x66   :  { %1402 = shalt.err (!%p1399_p5)
}
  0x67   :  { %54 = dma.hbm_to_vmem [thread:$0]  %s1825_s3, 256, %s1614_s15, [#allocation5], %s1483_s20, %s1483_s20, %s1484_s16  }
  0x68   :  { %s1489_s14 = smov [#allocation9]   ;;  %s1490_s17 = smov [#allocation12]  }
  0x69   :  { %s70_s4 = sshll.u32 %s1489_s14, 4  ;;  %s95_s19 = sshll.u32 %s1490_s17, 4  ;;  %s71_s4 = int_to_ptr.vmem [resolvable:$true] %s70_s4  ;;  %s96_s19 = int_to_ptr.vmem [resolvable:$true] %s95_s19 }
  0x6a   :  { %s1403_s23 = scalar_lea.hbm %s1827_s5, 512 }
  0x6b   :  { %p1404_p6 = scmp.ne.s32.totalorder %s1827_s5, %s1403_s23  ;;  %p1407_p7 = scmp.lt.u32.totalorder %s1403_s23, %s1827_s5 }
  0x6d   :  { %p1409_p8 = pnand %p1407_p7, %p1404_p6 }
  0x6f   :  { %1412 = shalt.err (!%p1409_p8)
}
  0x70   :  { %s1413_s3 = scalar_lea.vmem %s71_s4, 512  ;;  %p1418_p10 = scmp.lt.s32.totalorder %s71_s4, %s71_s4 }
  0x71   :  { %p1414_p9 = scmp.ne.s32.totalorder %s71_s4, %s1413_s3  ;;  %p1419_p11 = scmp.lt.s32.totalorder %s1413_s3, %s1413_s3 }
  0x73   :  { %p1420_p12 = por %p1419_p11, %p1418_p10 }
  0x75   :  { %p1421_p13 = pnand %p1420_p12, %p1414_p9 }
  0x77   :  { %1424 = shalt.err (!%p1421_p13)
}
  0x78   :  { %76 = dma.hbm_to_vmem [thread:$0]  %s1827_s5, 512, %s71_s4, [#allocation8], %s1483_s20, %s1483_s20, %s1484_s16  }
  0x79   :  { %s1425_s6 = scalar_lea.hbm %s1829_s7, 16 }
  0x7a   :  { %p1426_p0 = scmp.ne.s32.totalorder %s1829_s7, %s1425_s6  ;;  %p1429_p1 = scmp.lt.u32.totalorder %s1425_s6, %s1829_s7 }
  0x7c   :  { %p1431_p2 = pnand %p1429_p1, %p1426_p0 }
  0x7e   :  { %1434 = shalt.err (!%p1431_p2)
}
  0x7f   :  { %s1435_s1 = scalar_lea.vmem %s96_s19, 16  ;;  %s1439_s13 = scalar_lea.vmem %s96_s19, 32 }
  0x80   :  { %p1436_p3 = scmp.ne.s32.totalorder %s96_s19, %s1435_s1  ;;  %p1440_p4 = scmp.lt.s32.totalorder %s96_s19, %s96_s19 }
  0x81   :  { %p1441_p5 = scmp.lt.s32.totalorder %s1439_s13, %s1435_s1 }
  0x83   :  { %p1442_p6 = por %p1441_p5, %p1440_p4 }
  0x85   :  { %p1443_p7 = pnand %p1442_p6, %p1436_p3 }
  0x87   :  { %1446 = shalt.err (!%p1443_p7)
}
  0x88   :  { %98 = dma.hbm_to_vmem [thread:$0]  %s1829_s7, 16, %s96_s19, [#allocation11]  }
  0x89   :  { %s1491_s16 = smov [#allocation15]   ;;  %s1447_s21 = scalar_lea.hbm %s1831_s9, 160 }
  0x8a   :  { %s117_s14 = sshll.u32 %s1491_s16, 4  ;;  %p1448_p8 = scmp.ne.s32.totalorder %s1831_s9, %s1447_s21  ;;  %s118_s14 = int_to_ptr.vmem [resolvable:$true] %s117_s14 }
  0x8b   :  { %p1451_p9 = scmp.lt.u32.totalorder %s1447_s21, %s1831_s9 }
  0x8d   :  { %p1453_p10 = pnand %p1451_p9, %p1448_p8 }
  0x8f   :  { %1456 = shalt.err (!%p1453_p10)
}
  0x90   :  { %s1457_s27 = scalar_lea.vmem %s118_s14, 160  ;;  %p1462_p12 = scmp.lt.s32.totalorder %s118_s14, %s118_s14 }
  0x91   :  { %p1458_p11 = scmp.ne.s32.totalorder %s118_s14, %s1457_s27  ;;  %p1463_p13 = scmp.lt.s32.totalorder %s1457_s27, %s1457_s27 }
  0x93   :  { %p1464_p0 = por %p1463_p13, %p1462_p12 }
  0x95   :  { %p1465_p1 = pnand %p1464_p0, %p1458_p11 }
  0x97   :  { %1468 = shalt.err (!%p1465_p1)
}
  0x98   :  { %120 = dma.hbm_to_vmem [thread:$0]  %s1831_s9, 160, %s118_s14, [#allocation14]  }
  0x99   :  { %1469 = dma.done.wait [#allocation3], 128  }
  0x9a   :  { %1470 = vsyncadd [#allocation3], 4294967168 }
  0x9b   :  { %1471 = dma.done.wait [#allocation5], 272  }
  0x9c   :  { %1472 = vsyncadd [#allocation5], 4294967024 }
  0x9d   :  { %1473 = dma.done.wait [#allocation8], 528  }
  0x9e   :  { %1474 = vsyncadd [#allocation8], 4294966768 }
  0x9f   :  { %1475 = dma.done.wait [#allocation11], 272  }
  0xa0   :  { %1476 = vsyncadd [#allocation11], 4294967024 }
  0xa1   :  { %1477 = dma.done.wait [#allocation14], 5280  }
  0xa2   :  { %1478 = vsyncadd [#allocation14], 4294962016  ;;  %v1492_v0 = vmov 0.0   ;;  %vm1493_vm0 = vmmov 0   ;;  %vm164_vm1 = vcmask 1046528   ;;  %vm160_vm2 = vcmask 56320  }
  0xa3   :  { %1152 = vmatprep.subr.mxu0 %v1492_v0  ;;  %1154 = vmatprep.mubr.msk.f32.mxu0 %vm1493_vm0, %v1492_v0  ;;  %v152_v1 = vld [vmem:[#allocation2] sm:$0x7f]  ;;  %v239_v3 = vld [vmem:[#allocation6] sm:$0xff]  ;;  %v240_v4 = vld [vmem:[#allocation6 + $0x8] sm:$0xff]  ;;  %v1494_v6 = vmov 0.0|0.0   ;;  %vm248_vm3 = vcmask 130048  }
  0xa4   :  { %1161 = vmatprep.mubr.msk.f32.mxu1 %vm1493_vm0, %v1492_v0  ;;  %v151_v2 = vld [vmem:[%s1822_s0] sm:$0xff]  ;;  %1153 = vmatpush3.msk.msra.mxu0 %vm164_vm1, %v152_v1  ;;  %v1183_v5 = vpack.c.bf16 %v240_v4, %v239_v3  ;;  %v1066_v7 = vld [vmem:[#allocation4] ss:$0 sm:$0xff]  ;;  %v325_v18 = vld [vmem:[#allocation9 + $0x10] sm:$0xff]  ;;  %vm399_vm4 = vcmask 261120   ;;  %v1495_v46 = vmov 0  }
  0xa5   :  { %1155 = vmatmul.mubr.msk.f32.vlgmr.msra.gmra.mrb[0].mxu0 %vm160_vm2, %v151_v2  ;;  %1182 = vmatprep.subr.bf16.mxu1 %v1494_v6  ;;  %v327_v8 = vld [vmem:[#allocation10] sm:$0xff]  ;;  %v328_v9 = vld [vmem:[#allocation10 + $0x8] sm:$0xff]  ;;  %v326_v19 = vld [vmem:[#allocation9 + $0x18] sm:$0xff]  ;;  %vm777_vm5 = vcmask 523264  }
  0xa6   :  { %1184 = vmatpush3.bf16.msra.mxu1 %v1183_v5  ;;  %v1186_v13 = vpack.c.bf16 %v328_v9, %v327_v8  ;;  %v323_v15 = vld [vmem:[#allocation9] sm:$0xff]  ;;  %v324_v16 = vld [vmem:[#allocation9 + $0x8] sm:$0xff]  ;;  %v1192_v20 = vpack.c.bf16 %v326_v19, %v325_v18  ;;  %v1211_v21 = vld [vmem:[#allocation13] ss:$40 sps:$4 sm:$0xff]   ;;  %813 = vmatprep.mubr.bf16.mxu0 %v1495_v46 }
  0xa7   :  { %1185 = vmatprep.subr.bf16.mxu1 %v1494_v6  ;;  %v1189_v17 = vpack.c.bf16 %v324_v16, %v323_v15  ;;  %v1213_v22 = vld [vmem:[#allocation13 + $0x4] ss:$40 sps:$4 sm:$0xff]   ;;  %v1219_v24 = vld [vmem:[#allocation13 + $0x54] ss:$40 sps:$4 sm:$0xff]   ;;  %v1217_v25 = vld [vmem:[#allocation13 + $0x50] ss:$40 sps:$4 sm:$0xff]  }
  0xa8   :  { %v1216_v23 = vld [vmem:[#allocation13 + $0xc] ss:$40 sps:$4 sm:$0xff]   ;;  %781 = vmatprep.subr.bf16.mxu0 %v1213_v22  ;;  %v1214_v30 = vld [vmem:[#allocation13 + $0x8] ss:$40 sps:$4 sm:$0xff]   ;;  %v1222_v32 = vld [vmem:[#allocation13 + $0x5c] ss:$40 sps:$4 sm:$0xff]  }
  0xa9   :  { %782 = vmatpush1.bf16.msra.mxu0 %v1211_v21  ;;  %v1069_v26 = vld [vmem:[#allocation7] ss:$0 sm:$0xff]  ;;  %v1220_v35 = vld [vmem:[#allocation13 + $0x58] ss:$40 sps:$4 sm:$0xff]   ;;  %v1226_v39 = vld [vmem:[#allocation13 + $0xa8] ss:$40 sps:$4 sm:$0xff]  }
  0xaa   :  { %783 = vmatprep.subr.bf16.mxu0 %v1219_v24  ;;  %v1225_v36 = vld [vmem:[#allocation13 + $0xa4] ss:$40 sps:$4 sm:$0xff]   ;;  %v1223_v38 = vld [vmem:[#allocation13 + $0xa0] ss:$40 sps:$4 sm:$0xff]   ;;  %v1231_v40 = vld [vmem:[#allocation13 + $0xf4] ss:$40 sps:$4 sm:$0xff]  }
  0xab   :  { %v1228_v37 = vld [vmem:[#allocation13 + $0xac] ss:$40 sps:$4 sm:$0xff]   ;;  %v1234_v41 = vld [vmem:[#allocation13 + $0xfc] ss:$40 sps:$4 sm:$0xff]   ;;  %v1229_v42 = vld [vmem:[#allocation13 + $0xf0] ss:$40 sps:$4 sm:$0xff]  }
  0xac   :  { %v1232_v43 = vld [vmem:[#allocation13 + $0xf8] ss:$40 sps:$4 sm:$0xff]   ;;  %v1237_v44 = vld [vmem:[#allocation13 + $0x14] ss:$40 sps:$4 sm:$0xff]   ;;  %v1243_v56 = vld [vmem:[#allocation13 + $0x64] ss:$40 sps:$4 sm:$0xff]  }
  0xad   :  { %784 = vmatpush1.bf16.msra.mxu0 %v1217_v25  ;;  %v1240_v45 = vld [vmem:[#allocation13 + $0x1c] ss:$40 sps:$4 sm:$0xff]   ;;  %v1235_v53 = vld [vmem:[#allocation13 + $0x10] ss:$40 sps:$4 sm:$0xff]   ;;  %v1246_v57 = vld [vmem:[#allocation13 + $0x6c] ss:$40 sps:$4 sm:$0xff]  }
  0xae   :  { %785 = vmatprep.subr.bf16.mxu0 %v1225_v36  ;;  %v1073_v48 = vld [vmem:[#allocation12] ss:$0 sm:$0xff]  ;;  %v1238_v54 = vld [vmem:[#allocation13 + $0x18] ss:$40 sps:$4 sm:$0xff]   ;;  %v1244_v59 = vld [vmem:[#allocation13 + $0x68] ss:$40 sps:$4 sm:$0xff]  }
  0xaf   :  { %v1241_v58 = vld [vmem:[#allocation13 + $0x60] ss:$40 sps:$4 sm:$0xff]   ;;  %v1249_v60 = vld [vmem:[#allocation13 + $0xb4] ss:$40 sps:$4 sm:$0xff]   ;;  %v1247_v62 = vld [vmem:[#allocation13 + $0xb0] ss:$40 sps:$4 sm:$0xff]  }
  0xb0   :  { %v1252_v61 = vld [vmem:[#allocation13 + $0xbc] ss:$40 sps:$4 sm:$0xff]   ;;  %v1250_v63 = vld [vmem:[#allocation13 + $0xb8] ss:$40 sps:$4 sm:$0xff]   ;;  %v1258_v2 = vld [vmem:[#allocation13 + $0x10c] ss:$40 sps:$4 sm:$0xff]  }
  0xb1   :  { %786 = vmatpush1.bf16.msra.mxu0 %v1223_v38  ;;  %v1255_v1 = vld [vmem:[#allocation13 + $0x104] ss:$40 sps:$4 sm:$0xff]   ;;  %v1253_v3 = vld [vmem:[#allocation13 + $0x100] ss:$40 sps:$4 sm:$0xff]   ;;  %v1262_v8 = vld [vmem:[#allocation13 + $0x70] ss:$40 sps:$4 sm:$0xff]  }
  0xb2   :  { %787 = vmatprep.subr.bf16.mxu0 %v1231_v40  ;;  %v1256_v4 = vld [vmem:[#allocation13 + $0x108] ss:$40 sps:$4 sm:$0xff]   ;;  %v1261_v5 = vld [vmem:[#allocation13 + $0x24] ss:$40 sps:$4 sm:$0xff]  }
  0xb3   :  { %v1267_v9 = vld [vmem:[#allocation13 + $0xc4] ss:$40 sps:$4 sm:$0xff]   ;;  %v997_v21 = vld [vmem:[%s1832_s10] sm:$0xff] }
  0xb4   :  { %v1121_v22 = vld [vmem:[%s1832_s10 + $0x60] sm:$0xff]  ;;  %v1120_v24 = vld [vmem:[%s1832_s10 + $0x58] sm:$0xff] }
  0xb5   :  { %788 = vmatpush1.bf16.msra.mxu0 %v1229_v42 }
  0xb6   :  { %863 = vmatprep.subr.bf16.mxu0 %v1237_v44 }
 0x178   :  { %v234_v10 = vpop.f32.mrb[0].mxu0 }
 0x179   :  { %v235_v11 = vadd.f32 %v1066_v7, %v234_v10  ;;  %v1156_v12 = vpop.f32.mrb[1].mxu0  ;;  %v1264_v7 = vld [vmem:[#allocation13 + $0x74] ss:$40 sps:$4 sm:$0xff]   ;;  %v1265_v10 = vld [vmem:[#allocation13 + $0xc0] ss:$40 sps:$4 sm:$0xff]  }
 0x17a   :  { %v1268_v12 = vld [vmem:[#allocation13 + $0x110] ss:$40 sps:$4 sm:$0xff]  }
 0x17b   :  { %v238_v14 = vmax.f32 %v235_v11, 0.0  ;;  %v1270_v11 = vld [vmem:[#allocation13 + $0x114] ss:$40 sps:$4 sm:$0xff]  }
 0x17d   :  { %1162 = vmatmul.mubr.msk.f32.vlgmr.msra.gmra.mrb[0].mxu1 %vm248_vm3, %v238_v14 }
 0x17e   :  { %1187 = vmatpush3.bf16.msra.mxu1 %v1186_v13  ;;  %1168 = vmatprep.mubr.msk.f32.mxu1 %vm1493_vm0, %v1492_v0  ;;  %v527_v13 = vlaneseq }
 0x17f   :  { %1188 = vmatprep.subr.bf16.mxu1 %v1494_v6 }
 0x181   :  { %1169 = vmatmul.mubr.msk.f32.vlgmr.msra.gmra.mrb[2].mxu1 %vm248_vm3, %v238_v14  ;;  %v1704_v14 = vshrl.u32 %v527_v13, 7 }
 0x182   :  { %1190 = vmatpush3.bf16.msra.mxu1 %v1189_v17  ;;  %1179 = vmatprep.mubr.msk.f32.mxu1 %vm1493_vm0, %v1492_v0  ;;  %v523_v17 = vld [vmem:[#allocation15] sm:$0xff] }
 0x183   :  { %1191 = vmatprep.subr.bf16.mxu1 %v1494_v6  ;;  %v1259_v6 = vld [vmem:[#allocation13 + $0x20] ss:$40 sps:$4 sm:$0xff]   ;;  %v529_v15 = vsub.s32 0, %v1704_v14  ;;  %v537_v16 = vsub.s32 2, %v1704_v14  ;;  %v533_v18 = vsub.s32 1, %v1704_v14  ;;  %v541_v19 = vsub.s32 3, %v1704_v14 }
 0x185   :  { %v530_v25 = vrot.slane %v523_v17, %v529_v15 }
 0x186   :  { %1193 = vmatpush3.bf16.msra.mxu1 %v1192_v20  ;;  %v1119_v20 = vld [vmem:[%s1832_s10 + $0x50] sm:$0xff] }
 0x187   :  { %822 = vmatprep.subr.bf16.mxu1 %v1216_v23  ;;  %v999_v23 = vld [vmem:[%s1832_s10 + $0x10] sm:$0xff] }
 0x250   :  { %v318_v27 = vpop.f32.mrb[0].mxu1 }
 0x251   :  { %v319_v28 = vadd.f32 %v1069_v26, %v318_v27  ;;  %v1163_v29 = vpop.f32.mrb[1].mxu1  ;;  %v538_v26 = vrot.slane %v523_v17, %v537_v16  ;;  %v998_v27 = vld [vmem:[%s1832_s10 + $0x8] sm:$0xff] }
 0x252   :  { %v1000_v29 = vld [vmem:[%s1832_s10 + $0x18] sm:$0xff]  ;;  %v1008_v36 = vsub.f32 %v1120_v24, %v998_v27 }
 0x253   :  { %v322_v31 = vmax.f32 %v319_v28, 0.0  ;;  %v1122_v28 = vld [vmem:[%s1832_s10 + $0x68] sm:$0xff] }
 0x254   :  { %v395_v33 = vpop.f32.mrb[2].mxu1 }
 0x255   :  { %v1170_v34 = vpop.f32.mrb[3].mxu1  ;;  %1180 = vmatmul.mubr.msk.f32.vlgmr.msra.gmra.mrb[4].mxu1 %vm399_vm4, %v322_v31  ;;  %v542_v31 = vrot.slane %v523_v17, %v541_v19 }
 0x256   :  { %823 = vmatpush1.bf16.msra.mxu1 %v1214_v30  ;;  %854 = vmatprep.mubr.bf16.mxu1 %v1495_v46  ;;  %v534_v30 = vrot.slane %v523_v17, %v533_v18 }
 0x257   :  { %824 = vmatprep.subr.bf16.mxu1 %v1222_v32  ;;  %v1007_v32 = vsub.f32 %v1119_v20, %v997_v21 }
 0x25a   :  { %825 = vmatpush1.bf16.msra.mxu1 %v1220_v35 }
 0x25b   :  { %826 = vmatprep.subr.bf16.mxu1 %v1228_v37  ;;  %v1010_v37 = vsub.f32 %v1122_v28, %v1000_v29  ;;  %v524_v28 = vld [vmem:[#allocation15 + $0x8] sm:$0x3] }
 0x25c   :  { %v1127_v29 = vld [vmem:[%s1832_s10 + $0x90] sm:$0xff] }
 0x25e   :  { %827 = vmatpush1.bf16.msra.mxu1 %v1226_v39 }
 0x25f   :  { %828 = vmatprep.subr.bf16.mxu1 %v1234_v41 }
 0x262   :  { %829 = vmatpush1.bf16.msra.mxu1 %v1232_v43 }
 0x263   :  { %904 = vmatprep.subr.bf16.mxu1 %v1240_v45 }
 0x328   :  { %v469_v47 = vpop.f32.mrb[4].mxu1 }
 0x329   :  { %v470_v49 = vadd.f32 %v469_v47, %v395_v33  ;;  %v1181_v50 = vpop.f32.mrb[5].mxu1  ;;  %v1009_v33 = vsub.f32 %v1121_v22, %v999_v23 }
 0x32b   :  { %v480_v51 = vadd.f32 %v1073_v48, %v470_v49 }
 0x32d   :  { %v481_v52 = vmax.f32 %v480_v51, 0.0 }
 0x32f   :  { %v482_v55 = vpack.c.bf16 %v481_v52, %v481_v52  ;;  %v545_v52 = vsub.s32 4, %v1704_v14 }
 0x331   :  { %1114 = vmatmul.mubr.msk.bf16.vlgmr.msra.gmra.mrb[4].mxu0 %vm777_vm5, %v482_v55  ;;  %1115 = vmatmul.mubr.msk.bf16.vlgmr.msra.gmra.mrb[8].mxu1 %vm777_vm5, %v482_v55 }
 0x332   :  { %864 = vmatpush1.bf16.msra.mxu0 %v1235_v53  ;;  %905 = vmatpush1.bf16.msra.mxu1 %v1238_v54  ;;  %v553_v53 = vsub.s32 6, %v1704_v14  ;;  %v549_v54 = vsub.s32 5, %v1704_v14 }
 0x333   :  { %865 = vmatprep.subr.bf16.mxu0 %v1243_v56  ;;  %906 = vmatprep.subr.bf16.mxu1 %v1246_v57  ;;  %v1123_v56 = vld [vmem:[%s1832_s10 + $0x70] sm:$0xff]  ;;  %v1001_v57 = vld [vmem:[%s1832_s10 + $0x20] sm:$0xff] }
 0x334   :  { %895 = vmatprep.mubr.bf16.mxu0 %v1495_v46  ;;  %936 = vmatprep.mubr.bf16.mxu1 %v1495_v46 }
 0x336   :  { %866 = vmatpush1.bf16.msra.mxu0 %v1241_v58  ;;  %907 = vmatpush1.bf16.msra.mxu1 %v1244_v59  ;;  %v1125_v58 = vld [vmem:[%s1832_s10 + $0x80] sm:$0xff]  ;;  %v1003_v59 = vld [vmem:[%s1832_s10 + $0x30] sm:$0xff] }
 0x337   :  { %867 = vmatprep.subr.bf16.mxu0 %v1249_v60  ;;  %908 = vmatprep.subr.bf16.mxu1 %v1252_v61  ;;  %v1124_v60 = vld [vmem:[%s1832_s10 + $0x78] sm:$0xff]  ;;  %v546_v61 = vrot.slane %v523_v17, %v545_v52 }
 0x33a   :  { %868 = vmatpush1.bf16.msra.mxu0 %v1247_v62  ;;  %909 = vmatpush1.bf16.msra.mxu1 %v1250_v63  ;;  %v554_v62 = vrot.slane %v523_v17, %v553_v53  ;;  %v1002_v63 = vld [vmem:[%s1832_s10 + $0x28] sm:$0xff] }
 0x33b   :  { %869 = vmatprep.subr.bf16.mxu0 %v1255_v1  ;;  %910 = vmatprep.subr.bf16.mxu1 %v1258_v2  ;;  %v1126_v1 = vld [vmem:[%s1832_s10 + $0x88] sm:$0xff]  ;;  %v1004_v2 = vld [vmem:[%s1832_s10 + $0x38] sm:$0xff] }
 0x33e   :  { %870 = vmatpush1.bf16.msra.mxu0 %v1253_v3  ;;  %911 = vmatpush1.bf16.msra.mxu1 %v1256_v4  ;;  %v550_v3 = vrot.slane %v523_v17, %v549_v54 }
 0x33f   :  { %945 = vmatprep.subr.bf16.mxu0 %v1261_v5  ;;  %v1011_v5 = vsub.f32 %v1123_v56, %v1001_v57 }
 0x341   :  { %1116 = vmatmul.mubr.msk.bf16.vlgmr.msra.gmra.mrb[8].mxu0 %vm777_vm5, %v482_v55  ;;  %1117 = vmatmul.mubr.msk.bf16.vlgmr.msra.gmra.mrb[12].mxu1 %vm777_vm5, %v482_v55 }
 0x342   :  { %946 = vmatpush1.bf16.msra.mxu0 %v1259_v6  ;;  %977 = vmatprep.mubr.bf16.mxu0 %v1495_v46  ;;  %v1013_v6 = vsub.f32 %v1125_v58, %v1003_v59 }
 0x343   :  { %947 = vmatprep.subr.bf16.mxu0 %v1264_v7 }
 0x346   :  { %948 = vmatpush1.bf16.msra.mxu0 %v1262_v8 }
 0x347   :  { %949 = vmatprep.subr.bf16.mxu0 %v1267_v9  ;;  %v1012_v9 = vsub.f32 %v1124_v60, %v1002_v63 }
 0x34a   :  { %950 = vmatpush1.bf16.msra.mxu0 %v1265_v10  ;;  %v1014_v10 = vsub.f32 %v1126_v1, %v1004_v2 }
 0x34b   :  { %951 = vmatprep.subr.bf16.mxu0 %v1270_v11 }
 0x34e   :  { %952 = vmatpush1.bf16.msra.mxu0 %v1268_v12 }
 0x351   :  { %1118 = vmatmul.mubr.msk.bf16.vlgmr.msra.gmra.mrb[12].mxu0 %vm777_vm5, %v482_v55  ;;  %v557_v55 = vsub.s32 7, %v1704_v14 }
 0x353   :  { %v558_v4 = vrot.slane %v523_v17, %v557_v55 }
 0x404   :  { %v815_v34 = vpop.f32.mrb[4].mxu0  ;;  %v856_v35 = vpop.f32.mrb[8].mxu1 }
 0x405   :  { %v816_v38 = vadd.f32 %v815_v34, %v530_v25  ;;  %v857_v39 = vadd.f32 %v856_v35, %v538_v26  ;;  %v817_v40 = vpop.f32.mrb[5].mxu0  ;;  %v858_v41 = vpop.f32.mrb[9].mxu1  ;;  %v566_v34 = vrot.slane %v524_v28, %v533_v18 }
 0x406   :  { %v818_v42 = vadd.f32 %v817_v40, %v534_v30  ;;  %v859_v43 = vadd.f32 %v858_v41, %v542_v31  ;;  %v819_v44 = vpop.f32.mrb[6].mxu0  ;;  %v860_v45 = vpop.f32.mrb[10].mxu1  ;;  %v1005_v30 = vld [vmem:[%s1832_s10 + $0x40] sm:$0xff]  ;;  %v562_v31 = vrot.slane %v524_v28, %v529_v15 }
 0x407   :  { %vm1017_vm6 = vcmp.ge.f32.partialorder %v816_v38, %v1007_v32  ;;  %vm1019_vm7 = vcmp.ge.f32.partialorder %v857_v39, %v1009_v33  ;;  %v820_v46 = vpop.f32.mrb[7].mxu0  ;;  %v861_v47 = vpop.f32.mrb[11].mxu1  ;;  %v1128_v32 = vld [vmem:[%s1832_s10 + $0x98] sm:$0xff]  ;;  %v1006_v33 = vld [vmem:[%s1832_s10 + $0x48] sm:$0xff]  ;;  %v1015_v35 = vsub.f32 %v1127_v29, %v1005_v30 }
 0x408   :  { %v1129_v48 = vsel %vm1017_vm6, 1.0, %v1492_v0  ;;  %v1131_v49 = vsel %vm1019_vm7, 1.0, %v1492_v0  ;;  %vm1018_vm8 = vcmp.ge.f32.partialorder %v818_v42, %v1008_v36  ;;  %vm1020_vm9 = vcmp.ge.f32.partialorder %v859_v43, %v1010_v37 }
 0x409   :  { %1047 = vst [vmem:[%s1833_s11] sm:$0xff] %v1129_v48  ;;  %1049 = vst [vmem:[%s1833_s11 + $0x10] sm:$0xff] %v1131_v49  ;;  %v1130_v50 = vsel %vm1018_vm8, 1.0, %v1492_v0  ;;  %v1132_v51 = vsel %vm1020_vm9, 1.0, %v1492_v0  ;;  %v1016_v37 = vsub.f32 %v1128_v32, %v1006_v33 }
 0x40a   :  { %1048 = vst [vmem:[%s1833_s11 + $0x8] sm:$0xff] %v1130_v50  ;;  %1050 = vst [vmem:[%s1833_s11 + $0x18] sm:$0xff] %v1132_v51 }
 0x414   :  { %v897_v7 = vpop.f32.mrb[8].mxu0  ;;  %v938_v8 = vpop.f32.mrb[12].mxu1 }
 0x415   :  { %v898_v11 = vadd.f32 %v897_v7, %v546_v61  ;;  %v939_v12 = vadd.f32 %v938_v8, %v554_v62  ;;  %v899_v13 = vpop.f32.mrb[9].mxu0  ;;  %v940_v16 = vpop.f32.mrb[13].mxu1 }
 0x416   :  { %v900_v19 = vadd.f32 %v899_v13, %v550_v3  ;;  %v941_v20 = vadd.f32 %v940_v16, %v558_v4  ;;  %v901_v21 = vpop.f32.mrb[10].mxu0  ;;  %v942_v22 = vpop.f32.mrb[14].mxu1 }
 0x417   :  { %vm1021_vm10 = vcmp.ge.f32.partialorder %v898_v11, %v1011_v5  ;;  %vm1023_vm11 = vcmp.ge.f32.partialorder %v939_v12, %v1013_v6  ;;  %v902_v23 = vpop.f32.mrb[11].mxu0  ;;  %v943_v24 = vpop.f32.mrb[15].mxu1 }
 0x418   :  { %v1133_v17 = vsel %vm1021_vm10, 1.0, %v1492_v0  ;;  %v1135_v25 = vsel %vm1023_vm11, 1.0, %v1492_v0  ;;  %vm1022_vm12 = vcmp.ge.f32.partialorder %v900_v19, %v1012_v9  ;;  %vm1024_vm13 = vcmp.ge.f32.partialorder %v941_v20, %v1014_v10 }
 0x419   :  { %1051 = vst [vmem:[%s1833_s11 + $0x20] sm:$0xff] %v1133_v17  ;;  %1053 = vst [vmem:[%s1833_s11 + $0x30] sm:$0xff] %v1135_v25  ;;  %v1134_v26 = vsel %vm1022_vm12, 1.0, %v1492_v0  ;;  %v1136_v27 = vsel %vm1024_vm13, 1.0, %v1492_v0 }
 0x41a   :  { %1052 = vst [vmem:[%s1833_s11 + $0x28] sm:$0xff] %v1134_v26  ;;  %1054 = vst [vmem:[%s1833_s11 + $0x38] sm:$0xff] %v1136_v27 }
 0x424   :  { %v979_v36 = vpop.f32.mrb[12].mxu0 }
 0x425   :  { %v980_v38 = vadd.f32 %v979_v36, %v562_v31  ;;  %v981_v39 = vpop.f32.mrb[13].mxu0 }
 0x426   :  { %v982_v40 = vadd.f32 %v981_v39, %v566_v34  ;;  %v983_v41 = vpop.f32.mrb[14].mxu0 }
 0x427   :  { %vm1025_vm14 = vcmp.ge.f32.partialorder %v980_v38, %v1015_v35  ;;  %v984_v15 = vpop.f32.mrb[15].mxu0 }
 0x428   :  { %v1137_v42 = vsel %vm1025_vm14, 1.0, %v1492_v0  ;;  %vm1026_vm15 = vcmp.ge.f32.partialorder %v982_v40, %v1016_v37 }
 0x429   :  { %1055 = vst [vmem:[%s1833_s11 + $0x40] sm:$0xff] %v1137_v42  ;;  %v1138_v43 = vsel %vm1026_vm15, 1.0, %v1492_v0 }
 0x42a   :  { %1056 = vst [vmem:[%s1833_s11 + $0x48] sm:$0xff] %v1138_v43 }
 0x42b   :  { %1061 = vsyncpa [#allocation3], 1 }
 0x42c   :  { %1062 = vsyncpa [#allocation5], 1 }
 0x42d   :  { %1063 = vsyncpa [#allocation8], 1 }
 0x42e   :  { %1064 = vsyncpa [#allocation11], 1 }
 0x42f   :  { %1065 = vsyncpa [#allocation14], 1 }

</bundles_post_ra>
